<compile_context>
chip_gen: v6e
topology: v6e:2x2x1
jax: 0.10.0
libtpu: 0.0.40
codegen_flags: <defaults>
</compile_context>

<pallas_src>
import math
from functools import partial

import jax
import jax.numpy as jnp
from jax import lax
from jax.experimental import pallas as pl
from jax.experimental.pallas import tpu as pltpu


def _round_up(a, b):
    return (a + b - 1) // b * b


def _exact_gelu(x):
    # PyTorch F.gelu default is the exact erf-based GELU.
    return 0.5 * x * (1.0 + lax.erf(x * jnp.float32(1.0 / math.sqrt(2.0))))


def mlp_kernel(x_ref, w1_ref, b1_ref, w2_ref, b2_ref, o_ref, acc_ref):
    # x_ref:  (tm, Dp)   bf16
    # w1_ref: (Dp, th)   bf16      b1_ref: (1, th)  f32
    # w2_ref: (th, Dp)   bf16      b2_ref: (1, Dp)  f32
    # o_ref:  (tm, Dp)   out dtype
    # acc_ref:(tm, Dp)   f32 scratch accumulator (resident across the h axis)
    h_idx = pl.program_id(1)

    @pl.when(h_idx == 0)
    def _():
        acc_ref[...] = jnp.zeros_like(acc_ref)

    # First matmul on the MXU: bf16 operands, f32 accumulation.
    h = jnp.dot(x_ref[...], w1_ref[...], preferred_element_type=jnp.float32)
    h = h + b1_ref[...]          # bias in f32
    h = _exact_gelu(h)           # exact erf GELU (PyTorch parity), f32
    # Second matmul: cast the activation to bf16 once, accumulate in f32 scratch.
    acc_ref[...] += jnp.dot(h.astype(jnp.bfloat16), w2_ref[...],
                            preferred_element_type=jnp.float32)

    @pl.when(h_idx == pl.num_programs(1) - 1)
    def _():
        o_ref[...] = (acc_ref[...] + b2_ref[...]).astype(o_ref.dtype)


@partial(jax.jit, static_argnames=("tm", "th"))
def m_mlp_forward(x, w1, b1, w2, b2, *, tm=256, th=512):
    """x: (..., in_channels). w1: (D, H), b1: (H,), w2: (H, D), b2: (D,).
    Computes Linear -> exact GELU -> Linear along the last axis."""
    orig_shape = x.shape
    D = orig_shape[-1]
    H = w1.shape[1]
    x2 = x.reshape(-1, D)
    M = x2.shape[0]

    # ---- tile-size selection (all shapes are static under jit) ----
    Dp = _round_up(D, 128)                       # lane-dense feature dim
    Hp = _round_up(H, 128)                       # lane-dense hidden dim
    tm = min(tm, _round_up(M, 8))                # sublane-aligned row tile
    Mp = _round_up(M, tm)
    th_sel = 128
    for cand in (512, 384, 256, 128):            # largest 128-multiple tile dividing Hp
        if cand <= min(th, Hp) and Hp % cand == 0:
            th_sel = cand
            break
    th = th_sel

    # ---- pad + cast operands (zero padding is numerically inert) ----
    xb = jnp.pad(x2.astype(jnp.bfloat16), ((0, Mp - M), (0, Dp - D)))
    w1b = jnp.pad(w1.astype(jnp.bfloat16), ((0, Dp - D), (0, Hp - H)))
    w2b = jnp.pad(w2.astype(jnp.bfloat16), ((0, Hp - H), (0, Dp - D)))
    b1p = jnp.pad(b1.astype(jnp.float32).reshape(1, H), ((0, 0), (0, Hp - H)))
    b2p = jnp.pad(b2.astype(jnp.float32).reshape(1, D), ((0, 0), (0, Dp - D)))

    grid = (Mp // tm, Hp // th)

    # ---- VMEM budget (double-buffered inputs/outputs + f32 accumulator) ----
    bf, f4 = 2, 4
    vmem_bytes = (
        2 * tm * Dp * bf      # x tile
        + 2 * Dp * th * bf    # w1 tile
        + 2 * th * f4         # b1 tile
        + 2 * th * Dp * bf    # w2 tile
        + 2 * Dp * f4         # b2
        + 2 * tm * Dp * f4    # out tile
        + tm * Dp * f4        # accumulator scratch
    )
    vmem_limit = min(max(vmem_bytes + (4 << 20), 16 << 20), 64 << 20)

    cost = pl.CostEstimate(
        flops=4 * Mp * Dp * Hp,                      # two matmuls, 2*M*K*N each
        transcendentals=Mp * Hp,                     # erf per hidden activation
        bytes_accessed=(Mp * Dp * bf + Dp * Hp * bf + Hp * Dp * bf
                        + Hp * f4 + Dp * f4 + Mp * Dp * f4),
    )

    out = pl.pallas_call(
        mlp_kernel,
        out_shape=jax.ShapeDtypeStruct((Mp, Dp), x.dtype),
        grid_spec=pltpu.PrefetchScalarGridSpec(
            num_scalar_prefetch=0,
            grid=grid,
            in_specs=[
                pl.BlockSpec((tm, Dp), lambda i, h: (i, 0)),   # x tile (const over h)
                pl.BlockSpec((Dp, th), lambda i, h: (0, h)),   # W1 hidden-tile
                pl.BlockSpec((1, th), lambda i, h: (0, h)),    # b1 hidden-tile
                pl.BlockSpec((th, Dp), lambda i, h: (h, 0)),   # W2 hidden-tile
                pl.BlockSpec((1, Dp), lambda i, h: (0, 0)),    # b2 (constant)
            ],
            out_specs=pl.BlockSpec((tm, Dp), lambda i, h: (i, 0)),
            scratch_shapes=[pltpu.VMEM((tm, Dp), jnp.float32)],
        ),
        compiler_params=pltpu.CompilerParams(
            dimension_semantics=("parallel", "arbitrary"),
            vmem_limit_bytes=vmem_limit,
        ),
        cost_estimate=cost,
    )(xb, w1b, b1p, w2b, b2p)

    return out[:M, :D].reshape(orig_shape)


def init_mlp_params(key, in_channels, hid_channels, dtype=jnp.float32):
    """Deterministic init mimicking nn.Linear's uniform(-1/sqrt(fan_in), 1/sqrt(fan_in)).
    Weights stored as (in_features, out_features) so forward is x @ W + b."""
    k1, k2, k3, k4 = jax.random.split(key, 4)
    bound1 = 1.0 / math.sqrt(in_channels)
    bound2 = 1.0 / math.sqrt(hid_channels)
    w1 = jax.random.uniform(k1, (in_channels, hid_channels), dtype, -bound1, bound1)
    b1 = jax.random.uniform(k2, (hid_channels,), dtype, -bound1, bound1)
    w2 = jax.random.uniform(k3, (hid_channels, in_channels), dtype, -bound2, bound2)
    b2 = jax.random.uniform(k4, (in_channels,), dtype, -bound2, bound2)
    return w1, b1, w2, b2


if __name__ == "__main__":
    key = jax.random.PRNGKey(0)
    k_x, k_p = jax.random.split(key)

    batch, seq, in_channels, hid_channels = 2, 8, 32, 64
    x = jax.random.normal(k_x, (batch, seq, in_channels), dtype=jnp.float32)
    w1, b1, w2, b2 = init_mlp_params(k_p, in_channels, hid_channels)

    out = m_mlp_forward(x, w1, b1, w2, b2)
    out = jax.block_until_ready(out)

    # Reference in plain JAX with the same bf16 operand rounding (MXU accumulates f32).
    xb = x.reshape(-1, in_channels).astype(jnp.bfloat16).astype(jnp.float32)
    w1b = w1.astype(jnp.bfloat16).astype(jnp.float32)
    w2b = w2.astype(jnp.bfloat16).astype(jnp.float32)
    ref_h = xb @ w1b + b1
    ref_h = 0.5 * ref_h * (1.0 + lax.erf(ref_h / jnp.sqrt(2.0)))
    ref_h = ref_h.astype(jnp.bfloat16).astype(jnp.float32)
    ref = (ref_h @ w2b + b2).reshape(batch, seq, in_channels)

    assert out.shape == x.shape
    assert jnp.allclose(out, ref, atol=2e-3, rtol=2e-3)

    print("KERNEL_OK")
</pallas_src>

<mosaic_0001>
module attributes {stable_mosaic.version = 11 : i64} {
  func.func @mlp_kernel(%arg0: i32, %arg1: i32, %arg2: memref<16x128xbf16, #tpu.memory_space<vmem>>, %arg3: memref<128x128xbf16, #tpu.memory_space<vmem>>, %arg4: memref<1x128xf32, #tpu.memory_space<vmem>>, %arg5: memref<128x128xbf16, #tpu.memory_space<vmem>>, %arg6: memref<1x128xf32, #tpu.memory_space<vmem>>, %arg7: memref<16x128xf32, #tpu.memory_space<vmem>>, %arg8: memref<16x128xf32, #tpu.memory_space<vmem>>) attributes {dimension_semantics = [#tpu.dimension_semantics<parallel>, #tpu.dimension_semantics<arbitrary>], iteration_bounds = array<i64: 1, 1>, scalar_prefetch = 0 : i64, scratch_operands = 1 : i64, tpu.core_type = #tpu.core_type<tc>, window_params = [{transform_indices = @transform_0, window_bounds = array<i64: 16, 128>}, {transform_indices = @transform_1, window_bounds = array<i64: 128, 128>}, {transform_indices = @transform_2, window_bounds = array<i64: 1, 128>}, {transform_indices = @transform_3, window_bounds = array<i64: 128, 128>}, {pipeline_mode = #tpu.pipeline_mode<synchronous>, transform_indices = @transform_4, window_bounds = array<i64: 1, 128>}, {transform_indices = @transform_5, window_bounds = array<i64: 16, 128>}]} {
    %c0_i32 = arith.constant 0 : i32
    %0 = arith.cmpi eq, %arg1, %c0_i32 : i32
    %1 = arith.extui %0 : i1 to i32
    %c0_i32_0 = arith.constant 0 : i32
    %2 = arith.cmpi ne, %1, %c0_i32_0 : i32
    scf.if %2 {
      %cst_18 = arith.constant 0.000000e+00 : f32
      %26 = vector.broadcast %cst_18 : f32 to vector<16x128xf32>
      %c0_19 = arith.constant 0 : index
      %c0_20 = arith.constant 0 : index
      %27 = vector.load %arg8[%c0_19, %c0_20] : memref<16x128xf32, #tpu.memory_space<vmem>>, vector<16x128xf32>
      tpu.vector_store %arg8[%c0_19, %c0_20], %26 {strides = array<i32>} : memref<16x128xf32, #tpu.memory_space<vmem>>, vector<16x128xf32>,
    } else {
    }
    %c0 = arith.constant 0 : index
    %c0_1 = arith.constant 0 : index
    %3 = vector.load %arg2[%c0, %c0_1] : memref<16x128xbf16, #tpu.memory_space<vmem>>, vector<16x128xbf16>
    %c0_2 = arith.constant 0 : index
    %c0_3 = arith.constant 0 : index
    %4 = vector.load %arg3[%c0_2, %c0_3] : memref<128x128xbf16, #tpu.memory_space<vmem>>, vector<128x128xbf16>
    %cst = arith.constant dense<0.000000e+00> : vector<16x128xf32>
    %5 = tpu.matmul %3, %4, %cst {dimension_numbers = #tpu.dot_dimension_numbers<[1], [0], [0], [1], [0, 0, 1, 1], [], []>} : vector<16x128xbf16>, vector<128x128xbf16>, vector<16x128xf32> -> vector<16x128xf32>
    %c0_4 = arith.constant 0 : index
    %c0_5 = arith.constant 0 : index
    %6 = vector.load %arg4[%c0_4, %c0_5] : memref<1x128xf32, #tpu.memory_space<vmem>>, vector<1x128xf32>
    %7 = vector.broadcast %6 : vector<1x128xf32> to vector<16x128xf32>
    %8 = arith.addf %5, %7 : vector<16x128xf32>
    %cst_6 = arith.constant 5.000000e-01 : f32
    %9 = vector.broadcast %cst_6 : f32 to vector<16x128xf32>
    %10 = arith.mulf %9, %8 : vector<16x128xf32>
    %cst_7 = arith.constant 0.707106769 : f32
    %11 = vector.broadcast %cst_7 : f32 to vector<16x128xf32>
    %12 = arith.mulf %8, %11 : vector<16x128xf32>
    %13 = math.erf %12 : vector<16x128xf32>
    %cst_8 = arith.constant 1.000000e+00 : f32
    %14 = vector.broadcast %cst_8 : f32 to vector<16x128xf32>
    %15 = arith.addf %14, %13 : vector<16x128xf32>
    %16 = arith.mulf %10, %15 : vector<16x128xf32>
    %c0_9 = arith.constant 0 : index
    %c0_10 = arith.constant 0 : index
    %17 = vector.load %arg8[%c0_9, %c0_10] : memref<16x128xf32, #tpu.memory_space<vmem>>, vector<16x128xf32>
    %18 = arith.truncf %16 : vector<16x128xf32> to vector<16x128xbf16>
    %c0_11 = arith.constant 0 : index
    %c0_12 = arith.constant 0 : index
    %19 = vector.load %arg5[%c0_11, %c0_12] : memref<128x128xbf16, #tpu.memory_space<vmem>>, vector<128x128xbf16>
    %cst_13 = arith.constant dense<0.000000e+00> : vector<16x128xf32>
    %20 = tpu.matmul %18, %19, %cst_13 {dimension_numbers = #tpu.dot_dimension_numbers<[1], [0], [0], [1], [0, 0, 1, 1], [], []>} : vector<16x128xbf16>, vector<128x128xbf16>, vector<16x128xf32> -> vector<16x128xf32>
    %21 = arith.addf %17, %20 : vector<16x128xf32>
    %c0_14 = arith.constant 0 : index
    %c0_15 = arith.constant 0 : index
    %22 = vector.load %arg8[%c0_14, %c0_15] : memref<16x128xf32, #tpu.memory_space<vmem>>, vector<16x128xf32>
    tpu.vector_store %arg8[%c0_14, %c0_15], %21 {strides = array<i32>} : memref<16x128xf32, #tpu.memory_space<vmem>>, vector<16x128xf32>,
    %c0_i32_16 = arith.constant 0 : i32
    %23 = arith.cmpi eq, %arg1, %c0_i32_16 : i32
    %24 = arith.extui %23 : i1 to i32
    %c0_i32_17 = arith.constant 0 : i32
    %25 = arith.cmpi ne, %24, %c0_i32_17 : i32
    scf.if %25 {
      %c0_18 = arith.constant 0 : index
      %c0_19 = arith.constant 0 : index
      %26 = vector.load %arg8[%c0_18, %c0_19] : memref<16x128xf32, #tpu.memory_space<vmem>>, vector<16x128xf32>
      %c0_20 = arith.constant 0 : index
      %c0_21 = arith.constant 0 : index
      %27 = vector.load %arg6[%c0_20, %c0_21] : memref<1x128xf32, #tpu.memory_space<vmem>>, vector<1x128xf32>
      %28 = vector.broadcast %27 : vector<1x128xf32> to vector<16x128xf32>
      %29 = arith.addf %26, %28 : vector<16x128xf32>
      %c0_22 = arith.constant 0 : index
      %c0_23 = arith.constant 0 : index
      %30 = vector.load %arg7[%c0_22, %c0_23] : memref<16x128xf32, #tpu.memory_space<vmem>>, vector<16x128xf32>
      tpu.vector_store %arg7[%c0_22, %c0_23], %29 {strides = array<i32>} : memref<16x128xf32, #tpu.memory_space<vmem>>, vector<16x128xf32>,
    } else {
    }
    return
  }
  func.func @transform_0(%arg0: i32, %arg1: i32) -> (i32, i32) {
    %c0_i32 = arith.constant 0 : i32
    %c0_i32_0 = arith.constant 0 : i32
    return %arg0, %c0_i32 : i32, i32
  }
  func.func @transform_1(%arg0: i32, %arg1: i32) -> (i32, i32) {
    %c0_i32 = arith.constant 0 : i32
    %c0_i32_0 = arith.constant 0 : i32
    return %c0_i32, %arg1 : i32, i32
  }
  func.func @transform_2(%arg0: i32, %arg1: i32) -> (i32, i32) {
    %c0_i32 = arith.constant 0 : i32
    %c0_i32_0 = arith.constant 0 : i32
    return %c0_i32, %arg1 : i32, i32
  }
  func.func @transform_3(%arg0: i32, %arg1: i32) -> (i32, i32) {
    %c0_i32 = arith.constant 0 : i32
    %c0_i32_0 = arith.constant 0 : i32
    return %arg1, %c0_i32 : i32, i32
  }
  func.func @transform_4(%arg0: i32, %arg1: i32) -> (i32, i32) {
    %c0_i32 = arith.constant 0 : i32
    %c0_i32_0 = arith.constant 0 : i32
    %c0_i32_1 = arith.constant 0 : i32
    return %c0_i32, %c0_i32_0 : i32, i32
  }
  func.func @transform_5(%arg0: i32, %arg1: i32) -> (i32, i32) {
    %c0_i32 = arith.constant 0 : i32
    %c0_i32_0 = arith.constant 0 : i32
    return %arg0, %c0_i32 : i32, i32
  }
}

</mosaic_0001>

<bundles_post_ra>
// kernel: m_mlp_forward.1
= control target key start
LH: loop header
LB: loop body
LE: loop exit
PB: predicated region body
PF: predicated region fallthrough
CT: control target
= control target key end

     0   :  { %v389_v0 = vmov 0.0   ;;  %vm390_vm0 = vmmov 0   ;;  %s484_s1 = inlined_call_operand.vmem [shape: bf16[128,128], index: 1, kind: input, shape index: {}]   ;;  %s485_s3 = inlined_call_operand.vmem [shape: bf16[128,128], index: 3, kind: input, shape index: {}]   ;;  %s486_s0 = inlined_call_operand.vmem [shape: bf16[16,128], index: 0, kind: input, shape index: {}]   ;;  %s487_s2 = inlined_call_operand.vmem [shape: f32[1,128], index: 2, kind: input, shape index: {}]   ;;  %s488_s4 = inlined_call_operand.vmem [shape: f32[1,128], index: 4, kind: input, shape index: {}]   ;;  %s489_s5 = inlined_call_operand.vmem [shape: f32[16,128], index: 5, kind: output, shape index: {}]  }
   0x1   :  { %326 = vmatprep.subr.bf16.mxu0 %v389_v0  ;;  %v368_v1 = vld [vmem:[%s484_s1 + $0x38] sm:$0xff]   ;;  %342 = vmatprep.mubr.msk.bf16.mxu0 %vm390_vm0, %v389_v0  ;;  %v369_v2 = vld [vmem:[%s484_s1 + $0x30] sm:$0xff]   ;;  %v370_v3 = vld [vmem:[%s484_s1 + $0x28] sm:$0xff]  }
   0x2   :  { %346 = vmatprep.subr.bf16.mxu1 %v389_v0  ;;  %362 = vmatprep.mubr.msk.bf16.mxu1 %vm390_vm0, %v389_v0  ;;  %v377_v4 = vld [vmem:[%s485_s3 + $0x38] sm:$0xff]   ;;  %v371_v5 = vld [vmem:[%s484_s1 + $0x20] sm:$0xff]   ;;  %v373_v7 = vld [vmem:[%s484_s1 + $0x10] sm:$0xff]  }
   0x3   :  { %327 = vmatpush3.bf16.msra.mxu0 %v368_v1  ;;  %347 = vmatpush3.bf16.msra.mxu1 %v377_v4  ;;  %v372_v6 = vld [vmem:[%s484_s1 + $0x18] sm:$0xff]   ;;  %v374_v8 = vld [vmem:[%s484_s1 + $0x8] sm:$0xff]   ;;  %v375_v9 = vld [vmem:[%s484_s1] sm:$0xff]  }
   0x4   :  { %328 = vmatprep.subr.bf16.mxu0 %v389_v0  ;;  %348 = vmatprep.subr.bf16.mxu1 %v389_v0  ;;  %v376_v10 = vld [vmem:[%s486_s0] sm:$0xff]   ;;  %v378_v11 = vld [vmem:[%s485_s3 + $0x30] sm:$0xff]   ;;  %v379_v12 = vld [vmem:[%s485_s3 + $0x28] sm:$0xff]  }
   0x5   :  { %v380_v13 = vld [vmem:[%s485_s3 + $0x20] sm:$0xff]   ;;  %v381_v14 = vld [vmem:[%s485_s3 + $0x18] sm:$0xff]   ;;  %v382_v15 = vld [vmem:[%s485_s3 + $0x10] sm:$0xff]  }
   0x6   :  { %v383_v16 = vld [vmem:[%s485_s3 + $0x8] sm:$0xff]   ;;  %v384_v17 = vld [vmem:[%s485_s3] sm:$0xff]  }
   0x7   :  { %329 = vmatpush3.bf16.msra.mxu0 %v369_v2  ;;  %349 = vmatpush3.bf16.msra.mxu1 %v378_v11  ;;  %v289_v18 = vld [vmem:[%s487_s2] ss:$0 sm:$0xff] }
   0x8   :  { %330 = vmatprep.subr.bf16.mxu0 %v389_v0  ;;  %350 = vmatprep.subr.bf16.mxu1 %v389_v0  ;;  %v307_v36 = vld [vmem:[%s488_s4] ss:$0 sm:$0xff] }
   0xb   :  { %331 = vmatpush3.bf16.msra.mxu0 %v370_v3  ;;  %351 = vmatpush3.bf16.msra.mxu1 %v379_v12 }
   0xc   :  { %332 = vmatprep.subr.bf16.mxu0 %v389_v0  ;;  %352 = vmatprep.subr.bf16.mxu1 %v389_v0 }
   0xf   :  { %333 = vmatpush3.bf16.msra.mxu0 %v371_v5  ;;  %353 = vmatpush3.bf16.msra.mxu1 %v380_v13 }
  0x10   :  { %334 = vmatprep.subr.bf16.mxu0 %v389_v0  ;;  %354 = vmatprep.subr.bf16.mxu1 %v389_v0 }
  0x13   :  { %335 = vmatpush3.bf16.msra.mxu0 %v372_v6  ;;  %355 = vmatpush3.bf16.msra.mxu1 %v381_v14 }
  0x14   :  { %336 = vmatprep.subr.bf16.mxu0 %v389_v0  ;;  %356 = vmatprep.subr.bf16.mxu1 %v389_v0 }
  0x17   :  { %337 = vmatpush3.bf16.msra.mxu0 %v373_v7  ;;  %357 = vmatpush3.bf16.msra.mxu1 %v382_v15 }
  0x18   :  { %338 = vmatprep.subr.bf16.mxu0 %v389_v0  ;;  %358 = vmatprep.subr.bf16.mxu1 %v389_v0 }
  0x1b   :  { %339 = vmatpush3.bf16.msra.mxu0 %v374_v8  ;;  %359 = vmatpush3.bf16.msra.mxu1 %v383_v16 }
  0x1c   :  { %340 = vmatprep.subr.bf16.mxu0 %v389_v0  ;;  %360 = vmatprep.subr.bf16.mxu1 %v389_v0 }
  0x1f   :  { %341 = vmatpush3.bf16.msra.mxu0 %v375_v9  ;;  %361 = vmatpush3.bf16.msra.mxu1 %v384_v17 }
  0x22   :  { %343 = vmatmul.mubr.bf16.vlgmr.msra.gmra.mxu0 %v376_v10 }
  0xe2   :  { %v140_v19 = vpop.f32.mrf.mxu0 }
  0xe3   :  { %v141_v20 = vadd.f32 %v289_v18, %v140_v19 }
  0xe4   :  { %v344_v21 = vpop.f32.mrf.mxu0 }
  0xe5   :  { %v149_v22 = vmul.f32 0.70710677, %v141_v20  ;;  %v147_v30 = vmul.f32 0.5, %v141_v20 }
  0xe6   :  { %v143_v23 = vpop.f32.mrf.mxu0 }
  0xe7   :  { %385 = verf.f32 %v149_v22  ;;  %v144_v24 = vadd.f32 %v289_v18, %v143_v23 }
  0xe8   :  { %v345_v25 = vpop.f32.mrf.mxu0 }
  0xe9   :  { %v150_v26 = vmul.f32 0.70710677, %v144_v24  ;;  %v148_v31 = vmul.f32 0.5, %v144_v24 }
  0xeb   :  { %387 = verf.f32 %v150_v26 }
  0xf4   :  { %v386_v27 = vpop.eup %385 }
  0xf5   :  { %v153_v28 = vadd.f32 1.0, %v386_v27 }
  0xf7   :  { %v155_v33 = vmul.f32 %v153_v28, %v147_v30 }
  0xf8   :  { %v388_v29 = vpop.eup %387 }
  0xf9   :  { %v154_v32 = vadd.f32 1.0, %v388_v29 }
  0xfb   :  { %v156_v34 = vmul.f32 %v154_v32, %v148_v31 }
  0xfd   :  { %v159_v35 = vpack.c.bf16 %v156_v34, %v155_v33 }
  0xff   :  { %363 = vmatmul.mubr.bf16.vlgmr.msra.gmra.mxu1 %v159_v35 }
 0x1bf   :  { %v258_v37 = vpop.f32.mrf.mxu1 }
 0x1c0   :  { %v281_v38 = vadd.f32 %v307_v36, %v258_v37 }
 0x1c1   :  { %v364_v39 = vpop.f32.mrf.mxu1 }
 0x1c2   :  { %283 = vst [vmem:[%s489_s5] sm:$0xff] %v281_v38 }
 0x1c3   :  { %v261_v40 = vpop.f32.mrf.mxu1 }
 0x1c4   :  { %v282_v41 = vadd.f32 %v307_v36, %v261_v40 }
 0x1c5   :  { %v365_v42 = vpop.f32.mrf.mxu1 }
 0x1c6   :  { %284 = vst [vmem:[%s489_s5 + $0x8] sm:$0xff] %v282_v41 }

</bundles_post_ra>
